<compile_context>
chip_gen: v7x
topology: tpu7x:2x2x1
jax: 0.10.0
libtpu: 0.0.40
codegen_flags: <defaults>
</compile_context>

<pallas_src>
import functools

import numpy as np
import jax
import jax.numpy as jnp
from jax.experimental import pallas as pl
from jax.experimental.pallas import tpu as pltpu


# ---------------------------------------------------------------------------
# Host-side constant matrices (deterministic, tiny)
# ---------------------------------------------------------------------------

_K1D = np.array([1.0, 4.0, 6.0, 4.0, 1.0], dtype=np.float64) / 16.0  # separable 5-tap


def _bilinear_up_matrix(n: int) -> np.ndarray:
    """(2n x n) matrix implementing 1-D bilinear upsample, align_corners=True."""
    out_n = 2 * n
    a = np.zeros((out_n, n), dtype=np.float64)
    scale = (n - 1) / (out_n - 1)
    for i in range(out_n):
        src = i * scale
        i0 = min(int(np.floor(src)), n - 1)
        i1 = min(i0 + 1, n - 1)
        frac = src - i0
        a[i, i0] += 1.0 - frac
        a[i, i1] += frac
    return a


def _blur_matrix(m: int) -> np.ndarray:
    """(m x m) matrix implementing reflect-pad(2) + 1-D correlation with _K1D."""
    assert m > 2, "reflect padding of 2 requires spatial size > 2"
    b = np.zeros((m, m), dtype=np.float64)
    for r in range(m):
        for t in range(5):
            p = r + t - 2
            if p < 0:
                p = -p
            elif p >= m:
                p = 2 * (m - 1) - p
            assert 0 <= p < m  # guard against silent OOB (tiny planes)
            b[r, p] += _K1D[t]
    return b


# ---------------------------------------------------------------------------
# Pallas kernel: K channel-planes per grid step, out[p] = Mh @ x[p] @ MwT
# ---------------------------------------------------------------------------

def _pyrup_kernel(x_ref, mh_ref, mwt_ref, o_ref, *, k, h, w, mode):
    mwt = mwt_ref[...]                                # (W, 2W)

    if mode == "batched":
        # mh_ref holds block_diag(Mh, ..., Mh) of shape (K*2H, K*H).
        # Both reshapes are layout-free because h % 8 == 0 (sublane aligned).
        x2 = x_ref[...].reshape(k * h, w)                                     # (K*H, W)
        t = jnp.dot(x2, mwt, preferred_element_type=jnp.float32)              # (K*H, 2W)
        out = jnp.dot(mh_ref[...], t, preferred_element_type=jnp.float32)     # (K*2H, 2W)
        o_ref[...] = out.reshape(k, 2 * h, 2 * w).astype(o_ref.dtype)
    elif mode == "w_first_flat":
        # One big W-side matmul across all K planes, then per-plane H-side.
        mh = mh_ref[...]                                                      # (2H, H)
        x2 = x_ref[...].reshape(k * h, w)
        t_all = jnp.dot(x2, mwt, preferred_element_type=jnp.float32)          # (K*H, 2W)
        for p in range(k):                                                    # static unroll
            tp = t_all[p * h:(p + 1) * h, :]                                  # (H, 2W)
            out = jnp.dot(mh, tp, preferred_element_type=jnp.float32)         # (2H, 2W)
            o_ref[p] = out.astype(o_ref.dtype)
    elif mode == "h_first":
        # H > W: Mh first is the cheaper FLOP order.
        mh = mh_ref[...]
        for p in range(k):
            tp = jnp.dot(mh, x_ref[p], preferred_element_type=jnp.float32)    # (2H, W)
            out = jnp.dot(tp, mwt, preferred_element_type=jnp.float32)        # (2H, 2W)
            o_ref[p] = out.astype(o_ref.dtype)
    else:  # "w_first"
        mh = mh_ref[...]
        for p in range(k):
            tp = jnp.dot(x_ref[p], mwt, preferred_element_type=jnp.float32)   # (H, 2W)
            out = jnp.dot(mh, tp, preferred_element_type=jnp.float32)         # (2H, 2W)
            o_ref[p] = out.astype(o_ref.dtype)


def _choose_planes_per_step(num_planes: int, h: int, w: int) -> int:
    """Pick K (planes per grid step): divides num_planes, fits a VMEM budget,
    amortizes per-step overhead, and keeps >=2 grid steps for v7x's 2 TCs."""
    oh, ow = 2 * h, 2 * w
    in_bytes = h * w * 4
    out_bytes = oh * ow * 4
    mat_bytes = oh * h * 4 + w * ow * 4
    budget = 20 * 1024 * 1024                       # block working-set budget
    per_plane = 2 * (in_bytes + out_bytes)          # double-buffered in + out blocks
    if mat_bytes + per_plane > budget:
        k_vmem = 1
    else:
        k_vmem = (budget - mat_bytes) // per_plane
    k_cap = min(16, int(k_vmem))
    if num_planes >= 2:
        k_cap = min(k_cap, -(-num_planes // 2))     # keep at least 2 grid steps
    k_cap = max(1, min(k_cap, num_planes))
    for k in range(k_cap, 0, -1):
        if num_planes % k == 0:
            return k
    return 1


def pyr_up(x: jnp.ndarray) -> jnp.ndarray:
    """PyrUp: bilinear 2x upsample (align_corners=True) + 5x5 Gaussian blur (reflect)."""
    assert x.ndim == 4, "expected (B, C, H, W)"
    b, c, h, w = x.shape
    assert h >= 2 and w >= 2, "PyrUp reflect padding needs H >= 2 and W >= 2"
    oh, ow = 2 * h, 2 * w
    num_planes = b * c

    mh_np = (_blur_matrix(oh) @ _bilinear_up_matrix(h))        # (2H, H), float64
    mwt_np = (_blur_matrix(ow) @ _bilinear_up_matrix(w)).T     # (W, 2W), float64

    k = _choose_planes_per_step(num_planes, h, w)
    flatten_ok = (h % 8 == 0)   # (K,h,w)<->(K*h,w) reshape is layout-free only then

    # Mode selection (all static Python branches):
    #  - "batched": fuse the K H-side matmuls into one MXU matmul via a
    #    block-diagonal Mh.  Only for small planes, where the K^2 FLOP blow-up
    #    stays inside one MXU tile and MXU utilization / store shape improve.
    #  - otherwise fall back to the per-plane paths (FLOP-optimal order).
    if flatten_ok and (2 * h <= 64) and (k * h <= 256):
        mode = "batched"
        mh_use = np.kron(np.eye(k, dtype=np.float64), mh_np)   # (K*2H, K*H)
    elif h > w:
        mode = "h_first"
        mh_use = mh_np
    elif flatten_ok:
        mode = "w_first_flat"
        mh_use = mh_np
    else:
        mode = "w_first"
        mh_use = mh_np

    mh = jnp.asarray(mh_use.astype(np.float32))
    mwt = jnp.asarray(mwt_np.astype(np.float32))

    in_blk = k * h * w * 4
    out_blk = k * oh * ow * 4
    mat_bytes = mh.size * 4 + mwt.size * 4
    vmem_limit = int(min(max(2 * (in_blk + out_blk) + 2 * mat_bytes + (4 << 20), 32 << 20),
                         48 << 20))  # 48 MiB cap keeps headroom on v7x's 64 MiB VMEM

    xf = x.reshape(num_planes, h, w)
    kernel = functools.partial(_pyrup_kernel, k=k, h=h, w=w, mode=mode)

    out = pl.pallas_call(
        kernel,
        out_shape=jax.ShapeDtypeStruct((num_planes, oh, ow), x.dtype),
        grid=(num_planes // k,),
        in_specs=[
            pl.BlockSpec((k, h, w), lambda i: (i, 0, 0)),
            pl.BlockSpec(mh.shape, lambda i: (0, 0)),
            pl.BlockSpec((w, ow), lambda i: (0, 0)),
        ],
        out_specs=pl.BlockSpec((k, oh, ow), lambda i: (i, 0, 0)),
        compiler_params=pltpu.CompilerParams(
            dimension_semantics=("parallel",),
            vmem_limit_bytes=vmem_limit,
        ),
    )(xf, mh, mwt)

    # TODO(synk): for very large H/W (~1024+) add output-row tiling (t_oh blocks of Mh) or a
    # banded / pltpu.roll-based filter path; the dense (2H x H)/(W x 2W) matrices inflate
    # FLOPs and VMEM there.
    return out.reshape(b, c, oh, ow)


# ---------------------------------------------------------------------------
# Independent pure-JAX reference (for correctness check)
# ---------------------------------------------------------------------------

def _ref_pyr_up(x: jnp.ndarray) -> jnp.ndarray:
    k1 = np.array([1.0, 4.0, 6.0, 4.0, 1.0])
    k2d = jnp.asarray(np.outer(k1, k1) / 256.0, dtype=jnp.float32)
    b, c, h, w = x.shape
    oh, ow = 2 * h, 2 * w
    yi = jnp.arange(oh, dtype=jnp.float32) * ((h - 1) / (oh - 1))
    xi = jnp.arange(ow, dtype=jnp.float32) * ((w - 1) / (ow - 1))
    y0 = jnp.clip(jnp.floor(yi).astype(jnp.int32), 0, h - 1)
    x0 = jnp.clip(jnp.floor(xi).astype(jnp.int32), 0, w - 1)
    y1 = jnp.minimum(y0 + 1, h - 1)
    x1 = jnp.minimum(x0 + 1, w - 1)
    wy = (yi - y0.astype(jnp.float32))[:, None]
    wx = (xi - x0.astype(jnp.float32))[None, :]
    g00 = x[:, :, y0][:, :, :, x0]
    g01 = x[:, :, y0][:, :, :, x1]
    g10 = x[:, :, y1][:, :, :, x0]
    g11 = x[:, :, y1][:, :, :, x1]
    up = (
        g00 * (1 - wy) * (1 - wx)
        + g01 * (1 - wy) * wx
        + g10 * wy * (1 - wx)
        + g11 * wy * wx
    )
    pad = jnp.pad(up, ((0, 0), (0, 0), (2, 2), (2, 2)), mode="reflect")
    pad_f = pad.reshape(b * c, 1, oh + 4, ow + 4)
    out = jax.lax.conv_general_dilated(pad_f, k2d[None, None], (1, 1), "VALID")
    return out.reshape(b, c, oh, ow)


if __name__ == "__main__":
    key = jax.random.PRNGKey(0)
    x = jax.random.uniform(key, (2, 4, 16, 16), dtype=jnp.float32)

    out = pyr_up(x)
    jax.block_until_ready(out)

    assert out.shape == (2, 4, 32, 32), out.shape
    ref = _ref_pyr_up(x)
    assert jnp.allclose(out, ref, atol=1e-4, rtol=1e-4), float(jnp.max(jnp.abs(out - ref)))

    print("KERNEL_OK")
</pallas_src>

<mosaic_0001>
module attributes {stable_mosaic.version = 11 : i64} {
  func.func @_pyrup_kernel(%arg0: i32, %arg1: memref<4x16x16xf32, #tpu.memory_space<vmem>>, %arg2: memref<128x64xf32, #tpu.memory_space<vmem>>, %arg3: memref<16x32xf32, #tpu.memory_space<vmem>>, %arg4: memref<4x32x32xf32, #tpu.memory_space<vmem>>) attributes {dimension_semantics = [#tpu.dimension_semantics<parallel>], iteration_bounds = array<i64: 2>, scalar_prefetch = 0 : i64, scratch_operands = 0 : i64, tpu.core_type = #tpu.core_type<tc>, window_params = [{transform_indices = @transform_0, window_bounds = array<i64: 4, 16, 16>}, {pipeline_mode = #tpu.pipeline_mode<synchronous>, transform_indices = @transform_1, window_bounds = array<i64: 128, 64>}, {pipeline_mode = #tpu.pipeline_mode<synchronous>, transform_indices = @transform_2, window_bounds = array<i64: 16, 32>}, {transform_indices = @transform_3, window_bounds = array<i64: 4, 32, 32>}]} {
    %c0 = arith.constant 0 : index
    %c0_0 = arith.constant 0 : index
    %0 = vector.load %arg3[%c0, %c0_0] : memref<16x32xf32, #tpu.memory_space<vmem>>, vector<16x32xf32>
    %c0_1 = arith.constant 0 : index
    %c0_2 = arith.constant 0 : index
    %c0_3 = arith.constant 0 : index
    %1 = vector.load %arg1[%c0_1, %c0_2, %c0_3] : memref<4x16x16xf32, #tpu.memory_space<vmem>>, vector<4x16x16xf32>
    %2 = vector.shape_cast %1 : vector<4x16x16xf32> to vector<64x16xf32>
    %cst = arith.constant dense<0.000000e+00> : vector<64x32xf32>
    %3 = tpu.matmul %2, %0, %cst {dimension_numbers = #tpu.dot_dimension_numbers<[1], [0], [0], [1], [0, 0, 1, 1], [], []>} : vector<64x16xf32>, vector<16x32xf32>, vector<64x32xf32> -> vector<64x32xf32>
    %c0_4 = arith.constant 0 : index
    %c0_5 = arith.constant 0 : index
    %4 = vector.load %arg2[%c0_4, %c0_5] : memref<128x64xf32, #tpu.memory_space<vmem>>, vector<128x64xf32>
    %cst_6 = arith.constant dense<0.000000e+00> : vector<128x32xf32>
    %5 = tpu.matmul %4, %3, %cst_6 {dimension_numbers = #tpu.dot_dimension_numbers<[1], [0], [0], [1], [0, 0, 1, 1], [], []>} : vector<128x64xf32>, vector<64x32xf32>, vector<128x32xf32> -> vector<128x32xf32>
    %6 = vector.shape_cast %5 : vector<128x32xf32> to vector<4x32x32xf32>
    %c0_7 = arith.constant 0 : index
    %c0_8 = arith.constant 0 : index
    %c0_9 = arith.constant 0 : index
    %7 = vector.load %arg4[%c0_7, %c0_8, %c0_9] : memref<4x32x32xf32, #tpu.memory_space<vmem>>, vector<4x32x32xf32>
    tpu.vector_store %arg4[%c0_7, %c0_8, %c0_9], %6 {strides = array<i32>} : memref<4x32x32xf32, #tpu.memory_space<vmem>>, vector<4x32x32xf32>,
    return
  }
  func.func @transform_0(%arg0: i32) -> (i32, i32, i32) {
    %c0_i32 = arith.constant 0 : i32
    %c0_i32_0 = arith.constant 0 : i32
    %c0_i32_1 = arith.constant 0 : i32
    return %arg0, %c0_i32, %c0_i32_0 : i32, i32, i32
  }
  func.func @transform_1(%arg0: i32) -> (i32, i32) {
    %c0_i32 = arith.constant 0 : i32
    %c0_i32_0 = arith.constant 0 : i32
    %c0_i32_1 = arith.constant 0 : i32
    return %c0_i32, %c0_i32_0 : i32, i32
  }
  func.func @transform_2(%arg0: i32) -> (i32, i32) {
    %c0_i32 = arith.constant 0 : i32
    %c0_i32_0 = arith.constant 0 : i32
    %c0_i32_1 = arith.constant 0 : i32
    return %c0_i32, %c0_i32_0 : i32, i32
  }
  func.func @transform_3(%arg0: i32) -> (i32, i32, i32) {
    %c0_i32 = arith.constant 0 : i32
    %c0_i32_0 = arith.constant 0 : i32
    %c0_i32_1 = arith.constant 0 : i32
    return %arg0, %c0_i32, %c0_i32_0 : i32, i32, i32
  }
}

</mosaic_0001>

<bundles_post_ra>
// kernel: tpu_custom_call.1
= control target key start
LH: loop header
LB: loop body
LE: loop exit
PB: predicated region body
PF: predicated region fallthrough
CT: control target
= control target key end

     0   :  { %8 = vsyncpa [#allocation3], 0  ;;  %s1125_s0 = inlined_call_operand.vmem [shape: f32[8,16,16], index: 0, kind: input, shape index: {}]   ;;  %s1126_s1 = inlined_call_operand.vmem [shape: f32[128,64], index: 1, kind: input, shape index: {}]   ;;  %s1127_s2 = inlined_call_operand.vmem [shape: f32[16,32], index: 2, kind: input, shape index: {}]   ;;  %s1128_s3 = inlined_call_operand.hbm [shape: f32[8,32,32], index: 3, kind: output, shape index: {}]  }
   0x1   :  { %10 = vsyncpa [#allocation3 + $0x1], 0  ;;  %s906_s12 = smov 0   ;;  %s908_s13 = smov 0  }
   0x2   :  { %s910_s14 = smov 0   ;;  %s912_s15 = smov 0  }
   0x3 LB: > { %s927_s16 = sadd.s32 4294967295, %s881_s15   ;;  %s619_s17 = sadd.s32 4294967294, %s881_s15   ;;  %s881_s15 = sphi %s912_s15, %s1134_s15   ;;  %s877_s14 = sphi %s910_s14, %s1133_s14   ;;  %s873_s13 = sphi %s908_s13, %s1132_s13   ;;  %s869_s12 = sphi %s906_s12, %s1131_s12  }
   0x4   : > { %s931_s18 = sadd.s32 1, %s881_s15   ;;  %s91_s19 = sadd.s32 1, %s877_s14 }
   0x5   : > { %s88_s20 = ssub.s32 %s881_s15, %s931_s18  ;;  %p101_p0 = scmp.ne.s32.totalorder %s877_s14, %s873_s13 }
   0x6   : > { %p89_p1 = scmp.eq.s32.totalorder %s88_s20, 0  ;;  %p102_p2 = scmp.eq.s32.totalorder %s927_s16, 1 }
   0x7   : > { %p107_p3 = scmp.ne.s32.totalorder %s873_s13, %s869_s12  ;;  %p108_p4 = scmp.eq.s32.totalorder %s619_s17, 1 }
   0x8   : > { %s942_s21 = scalar_select %p89_p1, %s877_s14, %s91_s19  }
   0x9   : > { %p944_p5 = por %p102_p2, %p101_p0  ;;  %p948_p6 = por %p108_p4, %p107_p3 }
   0xa   : > { %p622_p7 = scmp.ge.s32.totalorder %s881_s15, 1  ;;  %p142_p8 = scmp.lt.s32.totalorder %s881_s15, 3 }
   0xc   : > { %p143_p9 = pnand %p622_p7, %p142_p8 }
   0xd   : > { %v175_v0 = vld [vmem:[%s1127_s2] sm:$0xff] (!%p143_p9)  ;;  %v176_v1 = vld [vmem:[%s1127_s2 + $0x8] sm:$0xff] (!%p143_p9)  ;;  %s624_s28 = sshll.u32 (!%p143_p9), %s927_s16, 2  ;;  %vm185_vm0 = vcmask (!%p143_p9), 130048   ;;  %v321_v11 = vld [vmem:[%s1126_s1 + $0x30] sm:$0xff] (!%p143_p9)  ;;  %vm331_vm1 = vcmask (!%p143_p9), 523264  }
   0xe   : > { %146 = sbr.rel (%p143_p9) target bundleno = 501 (0x1f5), region = 32  ;;  %v750_v2 = vpack.c.bf16 (!%p143_p9), %v176_v1, %v175_v0  ;;  %p168_p10 = scmp.lt.s32.totalorder (!%p143_p9), %s624_s28, 7  ;;  %735 = vmatprep.mubr.msk.f32.mxu1 (!%p143_p9), %vm331_vm1, %v321_v11  ;;  %v315_v12 = vld [vmem:[%s1126_s1] sm:$0xff] (!%p143_p9)  ;;  %v322_v25 = vld [vmem:[%s1126_s1 + $0x38] sm:$0xff] (!%p143_p9)  ;;  %v316_v26 = vld [vmem:[%s1126_s1 + $0x8] sm:$0xff] (!%p143_p9)  ;;  %vm525_vm2 = vcmask (!%p143_p9), 261120  }
   0xf   : > { %v323_v27 = vld [vmem:[%s1126_s1 + $0x40] sm:$0xff] (!%p143_p9)  ;;  %v317_v28 = vld [vmem:[%s1126_s1 + $0x10] sm:$0xff] (!%p143_p9)  ;;  %v324_v29 = vld [vmem:[%s1126_s1 + $0x48] sm:$0xff] (!%p143_p9)  ;;  %s883_s11 = smov (!%p143_p9), [#allocation2]  }
  0x10   : > { %751 = vmatprep.subr.bf16.mxu0 (!%p143_p9), %v750_v2  ;;  %v318_v30 = vld [vmem:[%s1126_s1 + $0x18] sm:$0xff] (!%p143_p9)  ;;  %v325_v31 = vld [vmem:[%s1126_s1 + $0x50] sm:$0xff] (!%p143_p9)  ;;  %v319_v32 = vld [vmem:[%s1126_s1 + $0x20] sm:$0xff] (!%p143_p9)  ;;  %s823_s17 = sshll.u32 (!%p143_p9), %s883_s11, 4  ;;  %s824_s17 = int_to_ptr.vmem [resolvable:$false] %s823_s17 }
  0x11   : > { %753 = vmatpush3.bf16.msra.mxu0 (!%p143_p9), %v750_v2  ;;  %v326_v33 = vld [vmem:[%s1126_s1 + $0x58] sm:$0xff] (!%p143_p9)  ;;  %v320_v34 = vld [vmem:[%s1126_s1 + $0x28] sm:$0xff] (!%p143_p9)  ;;  %v327_v35 = vld [vmem:[%s1126_s1 + $0x60] sm:$0xff] (!%p143_p9)  ;;  %s825_s19 = scalar_lea.vmem (!%p143_p9), %s824_s17, 4096 }
  0x12   : > { %v328_v36 = vld [vmem:[%s1126_s1 + $0x68] sm:$0xff] (!%p143_p9)  ;;  %v329_v37 = vld [vmem:[%s1126_s1 + $0x70] sm:$0xff] (!%p143_p9)  ;;  %v330_v38 = vld [vmem:[%s1126_s1 + $0x78] sm:$0xff] (!%p143_p9) }
  0x15   : > { %s1136_s28 = smov (!%p168_p10, %s624_s28), 7 }
  0x16   : > { %s657_s29 = sshll.u32 %s1136_s28, 4 }
  0x17   : > { %s172_s5 = scalar_lea.vmem %s1125_s0, %s657_s29  ;;  %s164_s29 = sand.u32 1, %s873_s13  }
  0x18   : > { %v177_v3 = vld [vmem:[%s172_s5] sm:$0xff]  ;;  %v178_v4 = vld [vmem:[%s172_s5 + $0x8] sm:$0xff]  ;;  %v179_v5 = vld [vmem:[%s172_s5 + $0x10] sm:$0xff]  ;;  %s623_s30 = sshll.u32 %s164_s29, 7 }
  0x19   : > { %698 = vmatprep.mubr.msk.f32.mxu0 %vm185_vm0, %v177_v3  ;;  %v180_v6 = vld [vmem:[%s172_s5 + $0x18] sm:$0xff]  ;;  %v181_v7 = vld [vmem:[%s172_s5 + $0x20] sm:$0xff]  ;;  %v182_v8 = vld [vmem:[%s172_s5 + $0x28] sm:$0xff]  ;;  %s1039_s4 = scalar_lea.vmem [#allocation2], %s623_s30 }
  0x1a   : > { %699 = vmatmul.mubr.msk.f32.vlgmr.msra.gmra.mrb[0].mxu0 %vm185_vm0, %v178_v4  ;;  %v183_v9 = vld [vmem:[%s172_s5 + $0x30] sm:$0xff]  ;;  %v184_v10 = vld [vmem:[%s172_s5 + $0x38] sm:$0xff]  ;;  %s659_s5 = sshll.u32 %s927_s16, 11  ;;  %s557_s6 = sshll.u32 %s1039_s4, 4  ;;  %s1076_s6 = int_to_ptr.vmem [resolvable:$true] %s557_s6 }
  0x1b   : > { %701 = vmatprep.mubr.msk.f32.mxu0 %vm185_vm0, %v179_v5  ;;  %s1074_s9 = scalar_lea.hbm %s1128_s3, %s659_s5  ;;  %s1084_s16 = scalar_lea.sflag [#allocation3], %s164_s29 }
  0x1c   : > { %s819_s10 = scalar_lea.vmem %s1076_s6, 2048  ;;  %p826_p0 = scmp.lt.s32.totalorder %s1076_s6, %s824_s17 }
  0x1d   : > { %p820_p11 = scmp.ne.s32.totalorder %s1076_s6, %s819_s10  ;;  %p827_p1 = scmp.lt.s32.totalorder %s825_s19, %s819_s10 }
  0x1e   : > { %702 = vmatmul.mubr.msk.f32.gmra.mrb[2].mxu0 %vm185_vm0, %v180_v6 }
  0x1f   : > { %704 = vmatprep.mubr.msk.f32.mxu0 %vm185_vm0, %v181_v7  ;;  %p821_p12 = pnand %p820_p11, %p944_p5  ;;  %p828_p2 = por %p827_p1, %p826_p0 }
  0x21   : > { %p822_p13 = pneg %p821_p12 }
  0x22   : > { %705 = vmatmul.mubr.msk.f32.gmra.mrb[4].mxu0 %vm185_vm0, %v182_v8 }
  0x23   : > { %707 = vmatprep.mubr.msk.f32.mxu0 %vm185_vm0, %v183_v9  ;;  %p829_p3 = pnand %p828_p2, %p822_p13 }
  0x26   : > { %708 = vmatmul.mubr.msk.f32.gmra.mrb[6].mxu0 %vm185_vm0, %v184_v10 }
  0x27   : > { %726 = vmatprep.mubr.msk.f32.mxu0 %vm331_vm1, %v315_v12 }
  0xed   : > { %v700_v13 = vpop.f32.mrb[0].mxu0 }
  0xee   : > { %v276_v14 = vpop.f32.mrb[1].mxu0 }
  0xef   : > { %v754_v15 = vpack.c.bf16 %v700_v13, %v276_v14 }
  0xf1   : > { %v703_v16 = vpop.f32.mrb[2].mxu0  ;;  %755 = vmatprep.subr.bf16.mxu0 %v754_v15  ;;  %770 = vmatprep.subr.bf16.mxu1 %v754_v15 }
  0xf2   : > { %v286_v17 = vpop.f32.mrb[3].mxu0  ;;  %757 = vmatpush3.bf16.msra.mxu0 %v754_v15  ;;  %774 = vmatpush3.bf16.msra.mxu1 %v754_v15 }
  0xf3   : > { %v758_v18 = vpack.c.bf16 %v703_v16, %v286_v17 }
  0xf5   : > { %v706_v19 = vpop.f32.mrb[4].mxu0  ;;  %759 = vmatprep.subr.bf16.mxu0 %v758_v18  ;;  %771 = vmatprep.subr.bf16.mxu1 %v758_v18 }
  0xf6   : > { %v296_v20 = vpop.f32.mrb[5].mxu0  ;;  %761 = vmatpush3.bf16.msra.mxu0 %v758_v18  ;;  %775 = vmatpush3.bf16.msra.mxu1 %v758_v18 }
  0xf7   : > { %v762_v21 = vpack.c.bf16 %v706_v19, %v296_v20 }
  0xf9   : > { %v709_v22 = vpop.f32.mrb[6].mxu0  ;;  %763 = vmatprep.subr.bf16.mxu0 %v762_v21  ;;  %772 = vmatprep.subr.bf16.mxu1 %v762_v21 }
  0xfa   : > { %v306_v23 = vpop.f32.mrb[7].mxu0  ;;  %765 = vmatpush3.bf16.msra.mxu0 %v762_v21  ;;  %776 = vmatpush3.bf16.msra.mxu1 %v762_v21 }
  0xfb   : > { %v766_v24 = vpack.c.bf16 %v709_v22, %v306_v23 }
  0xfd   : > { %767 = vmatprep.subr.bf16.mxu0 %v766_v24  ;;  %773 = vmatprep.subr.bf16.mxu1 %v766_v24 }
  0xfe   : > { %769 = vmatpush3.bf16.msra.mxu0 %v766_v24  ;;  %777 = vmatpush3.bf16.msra.mxu1 %v766_v24 }
 0x101   : > { %736 = vmatmul.mubr.msk.f32.vlgmr.msra.gmra.mrb[0].mxu1 %vm331_vm1, %v322_v25  ;;  %727 = vmatmul.mubr.msk.f32.vlgmr.msra.gmra.mrb[8].mxu0 %vm331_vm1, %v316_v26 }
 0x102   : > { %738 = vmatprep.mubr.msk.f32.mxu1 %vm331_vm1, %v323_v27  ;;  %729 = vmatprep.mubr.msk.f32.mxu0 %vm331_vm1, %v317_v28 }
 0x105   : > { %739 = vmatmul.mubr.msk.f32.gmra.mrb[2].mxu1 %vm331_vm1, %v324_v29  ;;  %730 = vmatmul.mubr.msk.f32.gmra.mrb[10].mxu0 %vm331_vm1, %v318_v30 }
 0x106   : > { %741 = vmatprep.mubr.msk.f32.mxu1 %vm331_vm1, %v325_v31  ;;  %732 = vmatprep.mubr.msk.f32.mxu0 %vm331_vm1, %v319_v32 }
 0x109   : > { %742 = vmatmul.mubr.msk.f32.gmra.mrb[4].mxu1 %vm331_vm1, %v326_v33  ;;  %733 = vmatmul.mubr.msk.f32.gmra.mrb[12].mxu0 %vm331_vm1, %v320_v34 }
 0x10a   : > { %744 = vmatprep.mubr.msk.f32.mxu1 %vm331_vm1, %v327_v35 }
 0x10d   : > { %745 = vmatmul.mubr.msk.f32.gmra.mrb[6].mxu1 %vm331_vm1, %v328_v36 }
 0x10e   : > { %747 = vmatprep.mubr.msk.f32.mxu1 %vm331_vm1, %v329_v37 }
 0x111   : > { %748 = vmatmul.mubr.msk.f32.gmra.mrb[8].mxu1 %vm331_vm1, %v330_v38 }
 0x1d4   : > { %v737_v39 = vpop.f32.mrb[0].mxu1  ;;  %v728_v40 = vpop.f32.mrb[8].mxu0 }
 0x1d5   : > { %533 = vst.msk [vmem:[%s1039_s4 + $0x38] sm:$0xff] %vm525_vm2, %v737_v39  ;;  %v476_v41 = vpop.f32.mrb[1].mxu1  ;;  %527 = vst.msk [vmem:[%s1039_s4 + $0x8] sm:$0xff] %vm525_vm2, %v728_v40  ;;  %v446_v42 = vpop.f32.mrb[9].mxu0 }
 0x1d6   : > { %532 = vst.msk [vmem:[%s1039_s4 + $0x30] sm:$0xff] %vm525_vm2, %v476_v41  ;;  %526 = vst.msk [vmem:[%s1039_s4] sm:$0xff] %vm525_vm2, %v446_v42 }
 0x1d8   : > { %v740_v43 = vpop.f32.mrb[2].mxu1  ;;  %v731_v44 = vpop.f32.mrb[10].mxu0 }
 0x1d9   : > { %535 = vst.msk [vmem:[%s1039_s4 + $0x48] sm:$0xff] %vm525_vm2, %v740_v43  ;;  %v486_v45 = vpop.f32.mrb[3].mxu1  ;;  %529 = vst.msk [vmem:[%s1039_s4 + $0x18] sm:$0xff] %vm525_vm2, %v731_v44  ;;  %v456_v46 = vpop.f32.mrb[11].mxu0 }
 0x1da   : > { %534 = vst.msk [vmem:[%s1039_s4 + $0x40] sm:$0xff] %vm525_vm2, %v486_v45  ;;  %528 = vst.msk [vmem:[%s1039_s4 + $0x10] sm:$0xff] %vm525_vm2, %v456_v46 }
 0x1dc   : > { %v743_v47 = vpop.f32.mrb[4].mxu1  ;;  %v734_v48 = vpop.f32.mrb[12].mxu0 }
 0x1dd   : > { %537 = vst.msk [vmem:[%s1039_s4 + $0x58] sm:$0xff] %vm525_vm2, %v743_v47  ;;  %v496_v49 = vpop.f32.mrb[5].mxu1  ;;  %531 = vst.msk [vmem:[%s1039_s4 + $0x28] sm:$0xff] %vm525_vm2, %v734_v48  ;;  %v466_v50 = vpop.f32.mrb[13].mxu0 }
 0x1de   : > { %536 = vst.msk [vmem:[%s1039_s4 + $0x50] sm:$0xff] %vm525_vm2, %v496_v49  ;;  %530 = vst.msk [vmem:[%s1039_s4 + $0x20] sm:$0xff] %vm525_vm2, %v466_v50 }
 0x1e0   : > { %v746_v51 = vpop.f32.mrb[6].mxu1 }
 0x1e1   : > { %539 = vst.msk [vmem:[%s1039_s4 + $0x68] sm:$0xff] %vm525_vm2, %v746_v51  ;;  %v506_v52 = vpop.f32.mrb[7].mxu1 }
 0x1e2   : > { %538 = vst.msk [vmem:[%s1039_s4 + $0x60] sm:$0xff] %vm525_vm2, %v506_v52 }
 0x1e4   : > { %v749_v53 = vpop.f32.mrb[8].mxu1 }
 0x1e5   : > { %541 = vst.msk [vmem:[%s1039_s4 + $0x78] sm:$0xff] %vm525_vm2, %v749_v53  ;;  %v516_v54 = vpop.f32.mrb[9].mxu1 }
 0x1e6   : > { %540 = vst.msk [vmem:[%s1039_s4 + $0x70] sm:$0xff] %vm525_vm2, %v516_v54 }
 0x1e7   : > { %832 = shalt.err (!%p829_p3)
}
 0x1e8   : > { %s833_s20 = scalar_lea.hbm %s1074_s9, 2048  ;;  %s837_s26 = scalar_lea.hbm %s1128_s3, 4096 }
 0x1e9   : > { %p834_p4 = scmp.ne.s32.totalorder %s1074_s9, %s833_s20  ;;  %p838_p9 = scmp.lt.u32.totalorder %s1074_s9, %s1128_s3 }
 0x1ea   : > { %p839_p10 = scmp.lt.u32.totalorder %s837_s26, %s833_s20  ;;  %p841_p12 = scmp.lt.u32.totalorder %s833_s20, %s1074_s9 }
 0x1eb   : > { %p835_p7 = pnand %p834_p4, %p944_p5 }
 0x1ec   : > { %p840_p11 = por %p839_p10, %p838_p9 }
 0x1ed   : > { %p836_p8 = pneg %p835_p7 }
 0x1ee   : > { %p842_p13 = por %p841_p12, %p840_p11 }
 0x1f0   : > { %p843_p0 = pnand %p842_p13, %p836_p8 }
 0x1f2   : > { %846 = shalt.err (!%p843_p0)
}
 0x1f3   : > { %s884_s29 = smov 128   ;;  %s885_s30 = smov 8  }
 0x1f4   : > { %778 = dma.vmem_to_hbm [thread:$0]  (%p944_p5), %s1076_s6, 2048, %s1074_s9, %s1084_s16, %s884_s29, %s884_s29, %s885_s30  }
 0x1f5 PF: > { %p784_p1 = scmp.ge.s32.totalorder %s881_s15, 2  ;;  %s572_s4 = sand.u32 1, %s869_s12  }
 0x1f6   : > { %s573_s5 = scalar_lea.sflag [#allocation3], %s572_s4 }
 0x1f7   : > { %p781_p2 = pnand %p784_p1, %p948_p6 }
 0x1f9   : > { %864 = dma.done.wait (!%p781_p2), %s573_s5, 2048  }
 0x1fa   : > { %866 = vsyncadd (!%p781_p2), %s573_s5, 4294965248  ;;  %p13_p3 = scmp.ge.s32.totalorder %s931_s18, 4   ;;  %s1131_s12 = smov %s873_s13 }
 0x1fb   : > { %s1132_s13 = smov %s877_s14  ;;  %s1133_s14 = smov %s942_s21 }
 0x1fc   : > { %s1134_s15 = smov %s931_s18  ;;  %15 = sbr.rel (!%p13_p3) target bundleno = 3 (0x3), region = 67 }
 0x203   :  { %578 = vsyncpa [#allocation3], 1 }
 0x204   :  { %580 = vsyncpa [#allocation3 + $0x1], 1 }

</bundles_post_ra>
